<compile_context>
chip_gen: v5e
topology: v5e:2x2
jax: 0.10.0
libtpu: 0.0.40
codegen_flags: <defaults>
</compile_context>

<pallas_src>
import jax
import jax.numpy as jnp
from jax.experimental import pallas as pl
from jax.experimental.pallas import tpu as pltpu


def _copy_kernel(x_ref, o_ref):
    # Pure pass-through: the base DynamicModule defines no transformation.
    o_ref[...] = x_ref[...]


_SUBLANE_MIN = {4: 8, 2: 16, 1: 32}        # row tiles must be multiples of this (packed sublanes)
_LANE_CAP = 2048                           # widest lane extent we flatten to (multiple of 128)
_TARGET_BLOCK_BYTES = 2 * 1024 * 1024      # ~2 MiB/block: 2x(in+out) double buffers ~= 8 MiB,
                                           # safe under 16 MiB (v5e) / 32 MiB (v6e, v7x)
                                           # scoped-VMEM defaults and v7x's 64 MiB physical VMEM.


def _pallas_copy(x: jax.Array) -> jax.Array:
    """Materialized identity copy of `x` as a tiled, pipelined Pallas TPU kernel."""
    orig_shape = x.shape
    total = int(x.size)
    if total == 0:
        return x  # nothing to copy; avoids invalid size-0 reshape

    itemsize = jnp.dtype(x.dtype).itemsize
    sublane_min = _SUBLANE_MIN.get(itemsize, 8)
    cost = pl.CostEstimate(flops=0, transcendentals=0,
                           bytes_accessed=2 * total * itemsize)

    if total % 128 == 0:
        # --- Lane-dense slab: (rows, lanes) with lanes a big multiple of 128
        #     -> full 128-lane unmasked stores.
        lanes = 128
        while total % (lanes * 2) == 0 and lanes * 2 <= _LANE_CAP:
            lanes *= 2
        rows = total // lanes
    else:
        # --- Fallback: last dim = FULL extent (layout-legal at any width);
        #     fold trailing dims to make it as wide as possible while keeping
        #     at least `sublane_min` rows within the per-block byte budget.
        lanes = 1
        for d in reversed(orig_shape):
            d = int(d)
            if lanes == 1 or lanes * d * itemsize * sublane_min <= _TARGET_BLOCK_BYTES:
                lanes *= d
            else:
                break
        rows = total // lanes

    # Row tile sized to the per-block byte budget, rounded down to the dtype's
    # packed-sublane multiple; full extent for small inputs (always legal).
    tile_rows = max(1, _TARGET_BLOCK_BYTES // (lanes * itemsize))
    tile_rows = max(sublane_min, (tile_rows // sublane_min) * sublane_min)
    if tile_rows >= rows:
        tile_rows = rows
    grid = (pl.cdiv(rows, tile_rows),)

    x2d = x.reshape(rows, lanes)
    out2d = pl.pallas_call(
        _copy_kernel,
        out_shape=jax.ShapeDtypeStruct((rows, lanes), x.dtype),
        grid=grid,
        in_specs=[pl.BlockSpec((tile_rows, lanes), lambda i: (i, 0))],
        out_specs=pl.BlockSpec((tile_rows, lanes), lambda i: (i, 0)),
        compiler_params=pltpu.CompilerParams(
            dimension_semantics=("parallel",),   # shard grid across TCs on v7x
        ),
        cost_estimate=cost,
    )(x2d)
    return out2d.reshape(orig_shape)


def dynamic_module_forward(x: jax.Array, *, materialize: bool = False) -> jax.Array:
    """Identity forward of the abstract DynamicModule.

    Default path is a zero-cost pass-through (no kernel launch, no HBM
    traffic).  `materialize=True` produces a fresh output buffer via the
    Pallas copy kernel (tiled, double-buffered, lane-dense).
    """
    if not materialize:
        return x
    return _pallas_copy(x)


class DynamicModuleJax:
    """Mirror of the PyTorch DynamicModule base class (no params, no state)."""

    def __init__(self):
        self.has_internal_state = False

    def get_requested_input(self, requested_output="internal"):
        raise NotImplementedError

    def forward(self, x):
        # Base class has no defined forward; the semantics-preserving
        # pass-through is the identity (zero-cost, no kernel launch).
        return dynamic_module_forward(x)

    def init_hidden(self, batch_size, device=None):
        if self.has_internal_state:
            raise NotImplementedError
        return None


if __name__ == "__main__":
    key = jax.random.PRNGKey(0)
    # Small NCHW input consistent with typical usage of this base class.
    x = jax.random.normal(key, (2, 4, 16, 16), dtype=jnp.float32)

    module = DynamicModuleJax()
    module.init_hidden(batch_size=2)  # no internal state -> no-op

    # Default forward: zero-cost identity (no kernel launch).
    y_fast = module.forward(x)
    assert y_fast.shape == x.shape and y_fast.dtype == x.dtype

    # Materialized path: run the Pallas copy kernel once (lane-dense path).
    y = dynamic_module_forward(x, materialize=True)
    y = jax.block_until_ready(y)
    assert y.shape == x.shape and y.dtype == x.dtype
    assert bool(jnp.array_equal(y, x))

    # Exercise the tiled fallback path (element count not divisible by 128).
    x_odd = jax.random.normal(key, (2, 3, 7, 5), dtype=jnp.float32)
    y_odd = jax.block_until_ready(dynamic_module_forward(x_odd, materialize=True))
    assert y_odd.shape == x_odd.shape and bool(jnp.array_equal(y_odd, x_odd))

    print("KERNEL_OK")
</pallas_src>

<mosaic_0001>
module attributes {stable_mosaic.version = 11 : i64} {
  func.func @_copy_kernel(%arg0: i32, %arg1: memref<1x2048xf32, #tpu.memory_space<vmem>>, %arg2: memref<1x2048xf32, #tpu.memory_space<vmem>>) attributes {dimension_semantics = [#tpu.dimension_semantics<parallel>], iteration_bounds = array<i64: 1>, scalar_prefetch = 0 : i64, scratch_operands = 0 : i64, tpu.core_type = #tpu.core_type<tc>, window_params = [{transform_indices = @transform_0, window_bounds = array<i64: 1, 2048>}, {transform_indices = @transform_1, window_bounds = array<i64: 1, 2048>}]} {
    %c0 = arith.constant 0 : index
    %c0_0 = arith.constant 0 : index
    %0 = vector.load %arg1[%c0, %c0_0] : memref<1x2048xf32, #tpu.memory_space<vmem>>, vector<1x2048xf32>
    %c0_1 = arith.constant 0 : index
    %c0_2 = arith.constant 0 : index
    %1 = vector.load %arg2[%c0_1, %c0_2] : memref<1x2048xf32, #tpu.memory_space<vmem>>, vector<1x2048xf32>
    tpu.vector_store %arg2[%c0_1, %c0_2], %0 {strides = array<i32>} : memref<1x2048xf32, #tpu.memory_space<vmem>>, vector<1x2048xf32>,
    return
  }
  func.func @transform_0(%arg0: i32) -> (i32, i32) {
    %c0_i32 = arith.constant 0 : i32
    %c0_i32_0 = arith.constant 0 : i32
    return %arg0, %c0_i32 : i32, i32
  }
  func.func @transform_1(%arg0: i32) -> (i32, i32) {
    %c0_i32 = arith.constant 0 : i32
    %c0_i32_0 = arith.constant 0 : i32
    return %arg0, %c0_i32 : i32, i32
  }
}

</mosaic_0001>

<bundles_post_ra>
// kernel: tpu_custom_call.1
= control target key start
LH: loop header
LB: loop body
LE: loop exit
PB: predicated region body
PF: predicated region fallthrough
CT: control target
= control target key end

     0   :  { %6 = vsyncpa [#allocation3], 0  ;;  %s116_s0 = inlined_call_operand.hbm [shape: f32[1,2048], index: 0, kind: input, shape index: {}]   ;;  %s117_s1 = inlined_call_operand.hbm [shape: f32[1,2048], index: 1, kind: output, shape index: {}]  }
   0x1   :  { %7 = vsyncpa [#allocation4], 0  ;;  %s13_s8 = sshll.u32 %s116_s0, 4  ;;  %s98_s9 = smov [#allocation2]   ;;  %s14_s8 = int_to_ptr.hbm [resolvable:$true] %s13_s8 }
   0x2   :  { %s15_s10 = sshll.u32 %s98_s9, 4  ;;  %s16_s10 = int_to_ptr.vmem [resolvable:$true] %s15_s10 }
   0x3   :  { %18 = dma.hbm_to_vmem [thread:$0]  %s14_s8, 256, %s16_s10, [#allocation3]  }
   0x4   :  { %94 = dma.done.wait [#allocation3], 256  }
   0x5   :  { %95 = vsyncadd [#allocation3], 4294967040  ;;  %s99_s11 = smov [#allocation5]   ;;  %s34_s15 = sshll.u32 %s117_s1, 4  ;;  %v23_v0 = vld [vmem:[#allocation2] sm:$0xff]  ;;  %v24_v1 = vld [vmem:[#allocation2 + $0x8] sm:$0xff]  ;;  %s35_s15 = int_to_ptr.hbm [resolvable:$true] %s34_s15 }
   0x6   :  { %s32_s12 = sshll.u32 %s99_s11, 4  ;;  %25 = vst [vmem:[#allocation5] sm:$0xff] %v23_v0  ;;  %s33_s12 = int_to_ptr.vmem [resolvable:$true] %s32_s12 }
   0x7   :  { %26 = vst [vmem:[#allocation5 + $0x8] sm:$0xff] %v24_v1 }
   0x8   :  { %37 = dma.vmem_to_hbm [thread:$0]  %s33_s12, 256, %s35_s15, [#allocation4]  }
   0x9   :  { %96 = dma.done.wait [#allocation4], 256  }
   0xa   :  { %97 = vsyncadd [#allocation4], 4294967040 }
   0xb   :  { %42 = vsyncpa [#allocation3], 1 }
   0xc   :  { %43 = vsyncpa [#allocation4], 1 }

</bundles_post_ra>
